<compile_context>
chip_gen: v7x
topology: tpu7x:2x2x1
jax: 0.10.0
libtpu: 0.0.40
codegen_flags: <defaults>
</compile_context>

<pallas_src>
import functools

import jax
import jax.numpy as jnp
from jax.experimental import pallas as pl
from jax.experimental.pallas import tpu as pltpu

LANE = 128          # lane width: last-dim padding target for stored outputs
SUBLANE_BF16 = 16   # bf16 packs two rows per sublane -> pad rows to 16
VMEM_LIMIT = 32 * 1024 * 1024   # explicit scoped-VMEM budget (safe on v5e/v6e/v7x)


# ---------------------------------------------------------------------------
# Pallas kernels
# ---------------------------------------------------------------------------
def _mm_bias_relu_kernel(x_ref, w_ref, b_ref, o_ref):
    """o = relu(x @ w + b); bf16 operands, f32 accumulate, f32 epilogue."""
    acc = jnp.dot(x_ref[...], w_ref[...], preferred_element_type=jnp.float32)
    o_ref[...] = jnp.maximum(acc + b_ref[...], 0.0).astype(o_ref.dtype)


def _dqn_tail_kernel(pr_ref, w3_ref, b3_ref, wfc1_ref, bfc1_ref,
                     wfc2_ref, bfc2_ref, o_ref, acc_ref):
    """Fused conv3 + flatten + fc1 + fc2 for one batch block.

    pr_ref  : (bn, p3 * K3pad) bf16  conv3 im2col patches, one 640-wide
                                     (128-aligned) lane slab per position.
    w3_ref  : (K3pad, 64)      bf16  conv3 weights (K zero-padded, C_out NOT
                                     padded: it only feeds the MXU, not HBM).
    wfc1_ref: (p3 * 64, 512)   bf16  fc1 weights, one 64-row block per conv3
                                     output position (folds the NCHW flatten).
    wfc2_ref: (512, 128)       bf16  fc2 weights, n_actions lane-padded.
    acc_ref : (bn, 512)        f32   VMEM scratch fc1 accumulator.
    """
    k3p = w3_ref.shape[0]
    c3 = w3_ref.shape[1]
    p3 = wfc1_ref.shape[0] // c3

    acc_ref[...] = jnp.zeros_like(acc_ref)
    # conv3 and fc1 interleaved per position: the live temporary is only
    # (bn, 64); the accumulator lives in VMEM, so vreg pressure stays bounded
    # even when this loop is long (49 positions at 84x84).
    for p in range(p3):                                   # static, small
        xp = pr_ref[:, p * k3p:(p + 1) * k3p]             # (bn, K3pad) bf16
        x3 = jnp.dot(xp, w3_ref[...], preferred_element_type=jnp.float32)
        x3 = jnp.maximum(x3 + b3_ref[...], 0.0)           # f32 epilogue
        acc_ref[...] += jnp.dot(x3.astype(jnp.bfloat16),
                                wfc1_ref[p * c3:(p + 1) * c3, :],
                                preferred_element_type=jnp.float32)
    h1 = jnp.maximum(acc_ref[...] + bfc1_ref[...], 0.0)   # (bn, 512) f32
    o_ref[...] = (jnp.dot(h1.astype(jnp.bfloat16), wfc2_ref[...],
                          preferred_element_type=jnp.float32)
                  + bfc2_ref[...]).astype(o_ref.dtype)


# ---------------------------------------------------------------------------
# Pallas call wrappers
# ---------------------------------------------------------------------------
def pallas_matmul_bias_relu(x, w, b, *, block_m=None, out_dtype=jnp.bfloat16):
    """relu(x @ w + b); x:(M,K) bf16, w:(K,Npad) bf16, b:(1,Npad) f32."""
    m, k = x.shape
    _, n_out = w.shape
    out_shape = jax.ShapeDtypeStruct((m, n_out), out_dtype)
    if block_m is None or m <= block_m:
        # Single whole-array block resident in VMEM (toy sizes).
        return pl.pallas_call(_mm_bias_relu_kernel, out_shape=out_shape)(x, w, b)
    # Large-M path: tile rows, keep weights resident, pipeline via BlockSpec.
    assert m % block_m == 0, "caller pads M to a multiple of block_m"
    return pl.pallas_call(
        _mm_bias_relu_kernel,
        out_shape=out_shape,
        grid=(m // block_m,),
        in_specs=[
            pl.BlockSpec((block_m, k), lambda i: (i, 0)),
            pl.BlockSpec((k, n_out), lambda i: (0, 0)),    # weights resident
            pl.BlockSpec((1, n_out), lambda i: (0, 0)),
        ],
        out_specs=pl.BlockSpec((block_m, n_out), lambda i: (i, 0)),
        compiler_params=pltpu.CompilerParams(
            dimension_semantics=("parallel",),             # dual-TC on v7x
            vmem_limit_bytes=VMEM_LIMIT),
    )(x, w, b)


# ---------------------------------------------------------------------------
# Plain-JAX glue: NHWC im2col (slices + lane-concat only, no transposes)
# ---------------------------------------------------------------------------
def _conv_out_hw(h, w, k, s):
    return (h - k) // s + 1, (w - k) // s + 1


def _pad_to_multiple(x, axis, mult):
    pad = (-x.shape[axis]) % mult
    if pad == 0:
        return x
    widths = [(0, 0)] * x.ndim
    widths[axis] = (0, pad)
    return jnp.pad(x, widths)


def _im2col_nhwc(x, kh, kw, stride):
    """x: (N, H, W, C) -> (N, OH, OW, KH*KW*C); K ordered (kh, kw, c)."""
    n, h, w, c = x.shape
    oh, ow = _conv_out_hw(h, w, kh, stride)
    cols = []
    for i in range(kh):
        for j in range(kw):
            cols.append(x[:, i:i + stride * oh:stride,
                          j:j + stride * ow:stride, :])
    return jnp.concatenate(cols, axis=-1), oh, ow


def conv2d_nhwc(x, wmat, bvec, kh, kw, stride, c_out, *, block_m=None):
    """NHWC conv = im2col + fused Pallas matmul+bias+relu; returns NHWC bf16."""
    n = x.shape[0]
    patches, oh, ow = _im2col_nhwc(x, kh, kw, stride)
    m = n * oh * ow
    x2d = patches.reshape(m, patches.shape[-1])
    row_mult = block_m if (block_m is not None and m > block_m) else SUBLANE_BF16
    x2d = _pad_to_multiple(x2d, 0, row_mult)
    out = pallas_matmul_bias_relu(x2d, wmat, bvec, block_m=block_m)
    # TODO(synk): verify in HLO that this un-pad slice fuses into the next
    # layer's im2col slices; the real fix is chaining layers inside VMEM.
    return out[:m, :c_out].reshape(n, oh, ow, c_out)


# ---------------------------------------------------------------------------
# Parameters: nn.Module-shaped init + one-time Pallas-friendly re-layout
# ---------------------------------------------------------------------------
def init_params(key, input_dims, n_actions):
    """Deterministic synthetic params with the same shapes as the nn.Module."""
    c, h, w = input_dims
    h1, w1 = _conv_out_hw(h, w, 8, 4)
    h2, w2 = _conv_out_hw(h1, w1, 4, 2)
    h3, w3 = _conv_out_hw(h2, w2, 3, 1)
    fc_input_dims = 64 * h3 * w3
    keys = jax.random.split(key, 10)
    s = 0.05
    return {
        "conv1_w": s * jax.random.normal(keys[0], (32, c, 8, 8), jnp.float32),
        "conv1_b": s * jax.random.normal(keys[1], (32,), jnp.float32),
        "conv2_w": s * jax.random.normal(keys[2], (64, 32, 4, 4), jnp.float32),
        "conv2_b": s * jax.random.normal(keys[3], (64,), jnp.float32),
        "conv3_w": s * jax.random.normal(keys[4], (64, 64, 3, 3), jnp.float32),
        "conv3_b": s * jax.random.normal(keys[5], (64,), jnp.float32),
        "fc1_w": s * jax.random.normal(keys[6], (512, fc_input_dims), jnp.float32),
        "fc1_b": s * jax.random.normal(keys[7], (512,), jnp.float32),
        "fc2_w": s * jax.random.normal(keys[8], (n_actions, 512), jnp.float32),
        "fc2_b": s * jax.random.normal(keys[9], (n_actions,), jnp.float32),
    }


def _prep_conv_weight(w, b, *, pad_cout_to=LANE, pad_k_to=None):
    """(C_out,C_in,KH,KW) -> (KH*KW*C_in [pad], C_out [pad]) bf16, bias f32."""
    c_out, c_in, kh, kw = w.shape
    wmat = w.transpose(2, 3, 1, 0).reshape(kh * kw * c_in, c_out)
    bmat = b.reshape(1, c_out)
    if pad_cout_to:
        wmat = _pad_to_multiple(wmat, 1, pad_cout_to)
        bmat = _pad_to_multiple(bmat, 1, pad_cout_to)
    if pad_k_to:
        wmat = _pad_to_multiple(wmat, 0, pad_k_to)
    return wmat.astype(jnp.bfloat16), bmat.astype(jnp.float32)


def prepare_params(params, input_dims):
    """One-time weight re-layout: NHWC K-order, bf16, lane padding, folded flatten."""
    c, h, w = input_dims
    h1, w1 = _conv_out_hw(h, w, 8, 4)
    h2, w2 = _conv_out_hw(h1, w1, 4, 2)
    h3, w3 = _conv_out_hw(h2, w2, 3, 1)
    p3 = h3 * w3
    c3 = params["conv3_w"].shape[0]                        # 64

    w1m, b1m = _prep_conv_weight(params["conv1_w"], params["conv1_b"])
    w2m, b2m = _prep_conv_weight(params["conv2_w"], params["conv2_b"])
    # conv3 output never touches HBM (fused tail), so do NOT pad its C_out;
    # only its K (patch) dim is padded to 128 for aligned lane slabs.
    w3m, b3m = _prep_conv_weight(params["conv3_w"], params["conv3_b"],
                                 pad_cout_to=None, pad_k_to=LANE)

    # fc1: PyTorch flatten order is (c, h, w).  Permute columns to NHWC
    # (h, w, c) and split into one 64-row block per conv3 output position.
    # No 64->128 K padding: K-padding is real MXU work.
    hid = params["fc1_w"].shape[0]
    fw = params["fc1_w"].reshape(hid, c3, h3, w3).transpose(0, 2, 3, 1)
    fw = fw.reshape(hid, p3, c3).transpose(1, 2, 0)        # (p3, 64, hid)
    wfc1 = fw.reshape(p3 * c3, hid).astype(jnp.bfloat16)
    bfc1 = params["fc1_b"].reshape(1, hid).astype(jnp.float32)

    wfc2 = _pad_to_multiple(params["fc2_w"].T, 1, LANE).astype(jnp.bfloat16)
    bfc2 = _pad_to_multiple(params["fc2_b"].reshape(1, -1), 1,
                            LANE).astype(jnp.float32)

    return {"w1": w1m, "b1": b1m, "w2": w2m, "b2": b2m, "w3": w3m, "b3": b3m,
            "wfc1": wfc1, "bfc1": bfc1, "wfc2": wfc2, "bfc2": bfc2}


# ---------------------------------------------------------------------------
# DeepQNetwork forward (3 pallas_calls: conv1, conv2, fused conv3+fc1+fc2 tail)
# ---------------------------------------------------------------------------
def deep_q_network_forward(prep, state, *, n_actions):
    """state: (N, C, H, W) f32 -> (N, n_actions) f32 (PyTorch forward semantics)."""
    n = state.shape[0]
    # NCHW -> NHWC once; bf16 activations from here on (f32 MXU accumulate).
    x = state.transpose(0, 2, 3, 1).astype(jnp.bfloat16)

    # TODO(synk): pull im2col into the conv kernels / fuse the whole chain in
    # VMEM; host im2col is the remaining HBM-glue cost at training batch.
    x = conv2d_nhwc(x, prep["w1"], prep["b1"], 8, 8, 4, c_out=32, block_m=512)
    x = conv2d_nhwc(x, prep["w2"], prep["b2"], 4, 4, 2, c_out=64, block_m=512)

    # Fused tail: conv3 + flatten + fc1 + fc2, batch-gridded, weights resident.
    patches3, oh3, ow3 = _im2col_nhwc(x, 3, 3, 1)
    p3 = oh3 * ow3
    k3 = patches3.shape[-1]
    k3_pad = prep["w3"].shape[0]

    n16 = -(-n // SUBLANE_BF16) * SUBLANE_BF16
    block_bn = min(128, n16)                   # <=128 rows/step bounds acc size
    n_pad = -(-n // block_bn) * block_bn

    # (n, p3, K) layout: no host transpose; positions become 128-aligned lane
    # slabs after the K pad, addressed with static slices in-kernel.
    pr = patches3.reshape(n, p3, k3)
    pr = jnp.pad(pr, ((0, n_pad - n), (0, 0), (0, k3_pad - k3)))
    pr = pr.reshape(n_pad, p3 * k3_pad)

    n_act_pad = prep["wfc2"].shape[1]
    hid = prep["wfc1"].shape[1]
    out = pl.pallas_call(
        _dqn_tail_kernel,
        out_shape=jax.ShapeDtypeStruct((n_pad, n_act_pad), jnp.float32),
        grid=(n_pad // block_bn,),
        in_specs=[
            pl.BlockSpec((block_bn, p3 * k3_pad), lambda i: (i, 0)),
            pl.BlockSpec(prep["w3"].shape, lambda i: (0, 0)),
            pl.BlockSpec(prep["b3"].shape, lambda i: (0, 0)),
            pl.BlockSpec(prep["wfc1"].shape, lambda i: (0, 0)),
            pl.BlockSpec(prep["bfc1"].shape, lambda i: (0, 0)),
            pl.BlockSpec(prep["wfc2"].shape, lambda i: (0, 0)),
            pl.BlockSpec(prep["bfc2"].shape, lambda i: (0, 0)),
        ],
        out_specs=pl.BlockSpec((block_bn, n_act_pad), lambda i: (i, 0)),
        scratch_shapes=[pltpu.VMEM((block_bn, hid), jnp.float32)],
        compiler_params=pltpu.CompilerParams(
            dimension_semantics=("parallel",),
            vmem_limit_bytes=VMEM_LIMIT),
    )(pr, prep["w3"], prep["b3"], prep["wfc1"], prep["bfc1"],
      prep["wfc2"], prep["bfc2"])
    return out[:n, :n_actions]


# ---------------------------------------------------------------------------
# Pure-JAX f32 reference (matches the PyTorch module) for a correctness check
# ---------------------------------------------------------------------------
def reference_forward(params, state):
    dn = ("NCHW", "OIHW", "NCHW")
    hi = jax.lax.Precision.HIGHEST

    def conv(x, w, b, s):
        y = jax.lax.conv_general_dilated(x, w, (s, s), "VALID",
                                         dimension_numbers=dn, precision=hi)
        return y + b.reshape(1, -1, 1, 1)

    h = jax.nn.relu(conv(state, params["conv1_w"], params["conv1_b"], 4))
    h = jax.nn.relu(conv(h, params["conv2_w"], params["conv2_b"], 2))
    h = jax.nn.relu(conv(h, params["conv3_w"], params["conv3_b"], 1))
    flat = h.reshape(h.shape[0], -1)
    h = jax.nn.relu(jnp.dot(flat, params["fc1_w"].T, precision=hi) + params["fc1_b"])
    return jnp.dot(h, params["fc2_w"].T, precision=hi) + params["fc2_b"]


if __name__ == "__main__":
    # Small DQN-consistent shapes: spatial chain 36 -> 8 -> 3 -> 1, fc_in = 64.
    batch, input_dims, n_actions = 2, (4, 36, 36), 6

    key = jax.random.PRNGKey(0)
    pkey, xkey = jax.random.split(key)
    params = init_params(pkey, input_dims, n_actions)
    prep = prepare_params(params, input_dims)
    state = jax.random.normal(xkey, (batch, *input_dims), jnp.float32)

    fwd = jax.jit(functools.partial(deep_q_network_forward, n_actions=n_actions))
    actions = fwd(prep, state)
    jax.block_until_ready(actions)

    assert actions.shape == (batch, n_actions)
    assert actions.dtype == jnp.float32

    ref = reference_forward(params, state)
    max_err = float(jnp.max(jnp.abs(actions - ref)))
    # bf16 matmul operands with f32 accumulation vs. the pure-f32 reference.
    assert max_err < 3e-2, f"mismatch vs reference: max abs err = {max_err}"

    print("KERNEL_OK")
</pallas_src>

<mosaic_0001>
module attributes {stable_mosaic.version = 11 : i64} {
  func.func @_mm_bias_relu_kernel(%arg0: memref<128x256xbf16, #tpu.memory_space<vmem>>, %arg1: memref<256x128xbf16, #tpu.memory_space<vmem>>, %arg2: memref<1x128xf32, #tpu.memory_space<vmem>>, %arg3: memref<128x128xbf16, #tpu.memory_space<vmem>>) attributes {dimension_semantics = [], scalar_prefetch = 0 : i64, scratch_operands = 0 : i64, tpu.core_type = #tpu.core_type<tc>} {
    %c0 = arith.constant 0 : index
    %c0_0 = arith.constant 0 : index
    %0 = vector.load %arg0[%c0, %c0_0] : memref<128x256xbf16, #tpu.memory_space<vmem>>, vector<128x256xbf16>
    %c0_1 = arith.constant 0 : index
    %c0_2 = arith.constant 0 : index
    %1 = vector.load %arg1[%c0_1, %c0_2] : memref<256x128xbf16, #tpu.memory_space<vmem>>, vector<256x128xbf16>
    %cst = arith.constant dense<0.000000e+00> : vector<128x128xf32>
    %2 = tpu.matmul %0, %1, %cst {dimension_numbers = #tpu.dot_dimension_numbers<[1], [0], [0], [1], [0, 0, 1, 1], [], []>} : vector<128x256xbf16>, vector<256x128xbf16>, vector<128x128xf32> -> vector<128x128xf32>
    %c0_3 = arith.constant 0 : index
    %c0_4 = arith.constant 0 : index
    %3 = vector.load %arg2[%c0_3, %c0_4] : memref<1x128xf32, #tpu.memory_space<vmem>>, vector<1x128xf32>
    %4 = vector.broadcast %3 : vector<1x128xf32> to vector<128x128xf32>
    %5 = arith.addf %2, %4 : vector<128x128xf32>
    %cst_5 = arith.constant 0.000000e+00 : f32
    %6 = vector.broadcast %cst_5 : f32 to vector<128x128xf32>
    %7 = arith.maximumf %5, %6 : vector<128x128xf32>
    %8 = arith.truncf %7 : vector<128x128xf32> to vector<128x128xbf16>
    %c0_6 = arith.constant 0 : index
    %c0_7 = arith.constant 0 : index
    %9 = vector.load %arg3[%c0_6, %c0_7] : memref<128x128xbf16, #tpu.memory_space<vmem>>, vector<128x128xbf16>
    tpu.vector_store %arg3[%c0_6, %c0_7], %8 {strides = array<i32>} : memref<128x128xbf16, #tpu.memory_space<vmem>>, vector<128x128xbf16>,
    return
  }
}

module attributes {stable_mosaic.version = 11 : i64} {
  func.func @_mm_bias_relu_kernel(%arg0: memref<32x512xbf16, #tpu.memory_space<vmem>>, %arg1: memref<512x128xbf16, #tpu.memory_space<vmem>>, %arg2: memref<1x128xf32, #tpu.memory_space<vmem>>, %arg3: memref<32x128xbf16, #tpu.memory_space<vmem>>) attributes {dimension_semantics = [], scalar_prefetch = 0 : i64, scratch_operands = 0 : i64, tpu.core_type = #tpu.core_type<tc>} {
    %c0 = arith.constant 0 : index
    %c0_0 = arith.constant 0 : index
    %0 = vector.load %arg0[%c0, %c0_0] : memref<32x512xbf16, #tpu.memory_space<vmem>>, vector<32x512xbf16>
    %c0_1 = arith.constant 0 : index
    %c0_2 = arith.constant 0 : index
    %1 = vector.load %arg1[%c0_1, %c0_2] : memref<512x128xbf16, #tpu.memory_space<vmem>>, vector<512x128xbf16>
    %cst = arith.constant dense<0.000000e+00> : vector<32x128xf32>
    %2 = tpu.matmul %0, %1, %cst {dimension_numbers = #tpu.dot_dimension_numbers<[1], [0], [0], [1], [0, 0, 1, 1], [], []>} : vector<32x512xbf16>, vector<512x128xbf16>, vector<32x128xf32> -> vector<32x128xf32>
    %c0_3 = arith.constant 0 : index
    %c0_4 = arith.constant 0 : index
    %3 = vector.load %arg2[%c0_3, %c0_4] : memref<1x128xf32, #tpu.memory_space<vmem>>, vector<1x128xf32>
    %4 = vector.broadcast %3 : vector<1x128xf32> to vector<32x128xf32>
    %5 = arith.addf %2, %4 : vector<32x128xf32>
    %cst_5 = arith.constant 0.000000e+00 : f32
    %6 = vector.broadcast %cst_5 : f32 to vector<32x128xf32>
    %7 = arith.maximumf %5, %6 : vector<32x128xf32>
    %8 = arith.truncf %7 : vector<32x128xf32> to vector<32x128xbf16>
    %c0_6 = arith.constant 0 : index
    %c0_7 = arith.constant 0 : index
    %9 = vector.load %arg3[%c0_6, %c0_7] : memref<32x128xbf16, #tpu.memory_space<vmem>>, vector<32x128xbf16>
    tpu.vector_store %arg3[%c0_6, %c0_7], %8 {strides = array<i32>} : memref<32x128xbf16, #tpu.memory_space<vmem>>, vector<32x128xbf16>,
    return
  }
}

module attributes {stable_mosaic.version = 11 : i64} {
  func.func @_dqn_tail_kernel(%arg0: i32, %arg1: memref<16x640xbf16, #tpu.memory_space<vmem>>, %arg2: memref<640x64xbf16, #tpu.memory_space<vmem>>, %arg3: memref<1x64xf32, #tpu.memory_space<vmem>>, %arg4: memref<64x512xbf16, #tpu.memory_space<vmem>>, %arg5: memref<1x512xf32, #tpu.memory_space<vmem>>, %arg6: memref<512x128xbf16, #tpu.memory_space<vmem>>, %arg7: memref<1x128xf32, #tpu.memory_space<vmem>>, %arg8: memref<16x128xf32, #tpu.memory_space<vmem>>, %arg9: memref<16x512xf32, #tpu.memory_space<vmem>>) attributes {dimension_semantics = [#tpu.dimension_semantics<parallel>], iteration_bounds = array<i64: 1>, scalar_prefetch = 0 : i64, scratch_operands = 1 : i64, tpu.core_type = #tpu.core_type<tc>, window_params = [{transform_indices = @transform_0, window_bounds = array<i64: 16, 640>}, {pipeline_mode = #tpu.pipeline_mode<synchronous>, transform_indices = @transform_1, window_bounds = array<i64: 640, 64>}, {pipeline_mode = #tpu.pipeline_mode<synchronous>, transform_indices = @transform_2, window_bounds = array<i64: 1, 64>}, {pipeline_mode = #tpu.pipeline_mode<synchronous>, transform_indices = @transform_3, window_bounds = array<i64: 64, 512>}, {pipeline_mode = #tpu.pipeline_mode<synchronous>, transform_indices = @transform_4, window_bounds = array<i64: 1, 512>}, {pipeline_mode = #tpu.pipeline_mode<synchronous>, transform_indices = @transform_5, window_bounds = array<i64: 512, 128>}, {pipeline_mode = #tpu.pipeline_mode<synchronous>, transform_indices = @transform_6, window_bounds = array<i64: 1, 128>}, {transform_indices = @transform_7, window_bounds = array<i64: 16, 128>}]} {
    %cst = arith.constant 0.000000e+00 : f32
    %0 = vector.broadcast %cst : f32 to vector<16x512xf32>
    %c0 = arith.constant 0 : index
    %c0_0 = arith.constant 0 : index
    %1 = vector.load %arg9[%c0, %c0_0] : memref<16x512xf32, #tpu.memory_space<vmem>>, vector<16x512xf32>
    tpu.vector_store %arg9[%c0, %c0_0], %0 {strides = array<i32>} : memref<16x512xf32, #tpu.memory_space<vmem>>, vector<16x512xf32>,
    %c0_1 = arith.constant 0 : index
    %c0_2 = arith.constant 0 : index
    %2 = vector.load %arg1[%c0_1, %c0_2] : memref<16x640xbf16, #tpu.memory_space<vmem>>, vector<16x640xbf16>
    %c0_3 = arith.constant 0 : index
    %c0_4 = arith.constant 0 : index
    %3 = vector.load %arg2[%c0_3, %c0_4] : memref<640x64xbf16, #tpu.memory_space<vmem>>, vector<640x64xbf16>
    %cst_5 = arith.constant dense<0.000000e+00> : vector<16x64xf32>
    %4 = tpu.matmul %2, %3, %cst_5 {dimension_numbers = #tpu.dot_dimension_numbers<[1], [0], [0], [1], [0, 0, 1, 1], [], []>} : vector<16x640xbf16>, vector<640x64xbf16>, vector<16x64xf32> -> vector<16x64xf32>
    %c0_6 = arith.constant 0 : index
    %c0_7 = arith.constant 0 : index
    %5 = vector.load %arg3[%c0_6, %c0_7] : memref<1x64xf32, #tpu.memory_space<vmem>>, vector<1x64xf32>
    %6 = vector.broadcast %5 : vector<1x64xf32> to vector<16x64xf32>
    %7 = arith.addf %4, %6 : vector<16x64xf32>
    %cst_8 = arith.constant 0.000000e+00 : f32
    %8 = vector.broadcast %cst_8 : f32 to vector<16x64xf32>
    %9 = arith.maximumf %7, %8 : vector<16x64xf32>
    %c0_9 = arith.constant 0 : index
    %c0_10 = arith.constant 0 : index
    %10 = vector.load %arg9[%c0_9, %c0_10] : memref<16x512xf32, #tpu.memory_space<vmem>>, vector<16x512xf32>
    %11 = arith.truncf %9 : vector<16x64xf32> to vector<16x64xbf16>
    %c0_11 = arith.constant 0 : index
    %c0_12 = arith.constant 0 : index
    %12 = vector.load %arg4[%c0_11, %c0_12] : memref<64x512xbf16, #tpu.memory_space<vmem>>, vector<64x512xbf16>
    %cst_13 = arith.constant dense<0.000000e+00> : vector<16x512xf32>
    %13 = tpu.matmul %11, %12, %cst_13 {dimension_numbers = #tpu.dot_dimension_numbers<[1], [0], [0], [1], [0, 0, 1, 1], [], []>} : vector<16x64xbf16>, vector<64x512xbf16>, vector<16x512xf32> -> vector<16x512xf32>
    %14 = arith.addf %10, %13 : vector<16x512xf32>
    %c0_14 = arith.constant 0 : index
    %c0_15 = arith.constant 0 : index
    %15 = vector.load %arg9[%c0_14, %c0_15] : memref<16x512xf32, #tpu.memory_space<vmem>>, vector<16x512xf32>
    tpu.vector_store %arg9[%c0_14, %c0_15], %14 {strides = array<i32>} : memref<16x512xf32, #tpu.memory_space<vmem>>, vector<16x512xf32>,
    %c0_16 = arith.constant 0 : index
    %c0_17 = arith.constant 0 : index
    %16 = vector.load %arg9[%c0_16, %c0_17] : memref<16x512xf32, #tpu.memory_space<vmem>>, vector<16x512xf32>
    %c0_18 = arith.constant 0 : index
    %c0_19 = arith.constant 0 : index
    %17 = vector.load %arg5[%c0_18, %c0_19] : memref<1x512xf32, #tpu.memory_space<vmem>>, vector<1x512xf32>
    %18 = vector.broadcast %17 : vector<1x512xf32> to vector<16x512xf32>
    %19 = arith.addf %16, %18 : vector<16x512xf32>
    %cst_20 = arith.constant 0.000000e+00 : f32
    %20 = vector.broadcast %cst_20 : f32 to vector<16x512xf32>
    %21 = arith.maximumf %19, %20 : vector<16x512xf32>
    %22 = arith.truncf %21 : vector<16x512xf32> to vector<16x512xbf16>
    %c0_21 = arith.constant 0 : index
    %c0_22 = arith.constant 0 : index
    %23 = vector.load %arg6[%c0_21, %c0_22] : memref<512x128xbf16, #tpu.memory_space<vmem>>, vector<512x128xbf16>
    %cst_23 = arith.constant dense<0.000000e+00> : vector<16x128xf32>
    %24 = tpu.matmul %22, %23, %cst_23 {dimension_numbers = #tpu.dot_dimension_numbers<[1], [0], [0], [1], [0, 0, 1, 1], [], []>} : vector<16x512xbf16>, vector<512x128xbf16>, vector<16x128xf32> -> vector<16x128xf32>
    %c0_24 = arith.constant 0 : index
    %c0_25 = arith.constant 0 : index
    %25 = vector.load %arg7[%c0_24, %c0_25] : memref<1x128xf32, #tpu.memory_space<vmem>>, vector<1x128xf32>
    %26 = vector.broadcast %25 : vector<1x128xf32> to vector<16x128xf32>
    %27 = arith.addf %24, %26 : vector<16x128xf32>
    %c0_26 = arith.constant 0 : index
    %c0_27 = arith.constant 0 : index
    %28 = vector.load %arg8[%c0_26, %c0_27] : memref<16x128xf32, #tpu.memory_space<vmem>>, vector<16x128xf32>
    tpu.vector_store %arg8[%c0_26, %c0_27], %27 {strides = array<i32>} : memref<16x128xf32, #tpu.memory_space<vmem>>, vector<16x128xf32>,
    return
  }
  func.func @transform_0(%arg0: i32) -> (i32, i32) {
    %c0_i32 = arith.constant 0 : i32
    %c0_i32_0 = arith.constant 0 : i32
    return %arg0, %c0_i32 : i32, i32
  }
  func.func @transform_1(%arg0: i32) -> (i32, i32) {
    %c0_i32 = arith.constant 0 : i32
    %c0_i32_0 = arith.constant 0 : i32
    %c0_i32_1 = arith.constant 0 : i32
    return %c0_i32, %c0_i32_0 : i32, i32
  }
  func.func @transform_2(%arg0: i32) -> (i32, i32) {
    %c0_i32 = arith.constant 0 : i32
    %c0_i32_0 = arith.constant 0 : i32
    %c0_i32_1 = arith.constant 0 : i32
    return %c0_i32, %c0_i32_0 : i32, i32
  }
  func.func @transform_3(%arg0: i32) -> (i32, i32) {
    %c0_i32 = arith.constant 0 : i32
    %c0_i32_0 = arith.constant 0 : i32
    %c0_i32_1 = arith.constant 0 : i32
    return %c0_i32, %c0_i32_0 : i32, i32
  }
  func.func @transform_4(%arg0: i32) -> (i32, i32) {
    %c0_i32 = arith.constant 0 : i32
    %c0_i32_0 = arith.constant 0 : i32
    %c0_i32_1 = arith.constant 0 : i32
    return %c0_i32, %c0_i32_0 : i32, i32
  }
  func.func @transform_5(%arg0: i32) -> (i32, i32) {
    %c0_i32 = arith.constant 0 : i32
    %c0_i32_0 = arith.constant 0 : i32
    %c0_i32_1 = arith.constant 0 : i32
    return %c0_i32, %c0_i32_0 : i32, i32
  }
  func.func @transform_6(%arg0: i32) -> (i32, i32) {
    %c0_i32 = arith.constant 0 : i32
    %c0_i32_0 = arith.constant 0 : i32
    %c0_i32_1 = arith.constant 0 : i32
    return %c0_i32, %c0_i32_0 : i32, i32
  }
  func.func @transform_7(%arg0: i32) -> (i32, i32) {
    %c0_i32 = arith.constant 0 : i32
    %c0_i32_0 = arith.constant 0 : i32
    return %arg0, %c0_i32 : i32, i32
  }
}

</mosaic_0001>

<bundles_post_ra>
// kernel: deep_q_network_forward.3
= control target key start
LH: loop header
LB: loop body
LE: loop exit
PB: predicated region body
PF: predicated region fallthrough
CT: control target
= control target key end

     0   :  { %s836_s1 = inlined_call_operand.vmem [shape: bf16[256,128], index: 1, kind: input, shape index: {}]   ;;  %s837_s0 = inlined_call_operand.vmem [shape: bf16[128,256], index: 0, kind: input, shape index: {}]   ;;  %s838_s2 = inlined_call_operand.vmem [shape: f32[1,128], index: 2, kind: input, shape index: {}]   ;;  %s839_s3 = inlined_call_operand.vmem [shape: bf16[128,128], index: 3, kind: output, shape index: {}]  }
   0x1   :  { %v635_v0 = vld [vmem:[%s836_s1 + $0x40] sm:$0xff]   ;;  %v637_v2 = vld [vmem:[%s836_s1 + $0x48] sm:$0xff]   ;;  %v639_v4 = vld [vmem:[%s836_s1 + $0x50] sm:$0xff]  }
   0x2   :  { %v636_v1 = vld [vmem:[%s836_s1] sm:$0xff]   ;;  %555 = vmatprep.subr.bf16.mxu0 %v635_v0  ;;  %619 = vmatprep.subr.bf16.mxu1 %v635_v0  ;;  %v638_v3 = vld [vmem:[%s836_s1 + $0x8] sm:$0xff]   ;;  %v640_v5 = vld [vmem:[%s836_s1 + $0x10] sm:$0xff]  }
   0x3   :  { %556 = vmatpush3.bf16.msra.mxu0 %v636_v1  ;;  %627 = vmatpush3.bf16.msra.mxu1 %v636_v1  ;;  %v641_v6 = vld [vmem:[%s836_s1 + $0x58] sm:$0xff]   ;;  %v643_v8 = vld [vmem:[%s836_s1 + $0x60] sm:$0xff]   ;;  %v645_v10 = vld [vmem:[%s836_s1 + $0x68] sm:$0xff]  }
   0x4   :  { %557 = vmatprep.subr.bf16.mxu0 %v637_v2  ;;  %620 = vmatprep.subr.bf16.mxu1 %v637_v2  ;;  %v642_v7 = vld [vmem:[%s836_s1 + $0x18] sm:$0xff]   ;;  %v644_v9 = vld [vmem:[%s836_s1 + $0x20] sm:$0xff]   ;;  %v646_v13 = vld [vmem:[%s836_s1 + $0x28] sm:$0xff]  }
   0x5   :  { %v653_v11 = vld [vmem:[%s837_s0 + $0x4] ss:$8 sps:$4 sm:$0xff]   ;;  %v647_v14 = vld [vmem:[%s836_s1 + $0x70] sm:$0xff]   ;;  %v649_v16 = vld [vmem:[%s836_s1 + $0x78] sm:$0xff]  }
   0x6   :  { %v656_v12 = vld [vmem:[%s837_s0 + $0x44] ss:$8 sps:$4 sm:$0xff]   ;;  %278 = vmatprep.mubr.bf16.mxu0 %v653_v11  ;;  %v648_v15 = vld [vmem:[%s836_s1 + $0x30] sm:$0xff]   ;;  %v650_v17 = vld [vmem:[%s836_s1 + $0x38] sm:$0xff]  }
   0x7   :  { %558 = vmatpush3.bf16.msra.mxu0 %v638_v3  ;;  %628 = vmatpush3.bf16.msra.mxu1 %v638_v3  ;;  %v651_v18 = vld [vmem:[%s837_s0] ss:$8 sps:$4 sm:$0xff]   ;;  %v657_v20 = vld [vmem:[%s837_s0 + $0x14] ss:$8 sps:$4 sm:$0xff]   ;;  %v661_v22 = vld [vmem:[%s837_s0 + $0x10] ss:$8 sps:$4 sm:$0xff]  }
   0x8   :  { %559 = vmatprep.subr.bf16.mxu0 %v639_v4  ;;  %621 = vmatprep.subr.bf16.mxu1 %v639_v4  ;;  %v654_v19 = vld [vmem:[%s837_s0 + $0x40] ss:$8 sps:$4 sm:$0xff]   ;;  %v659_v21 = vld [vmem:[%s837_s0 + $0x54] ss:$8 sps:$4 sm:$0xff]   ;;  %v662_v23 = vld [vmem:[%s837_s0 + $0x50] ss:$8 sps:$4 sm:$0xff]  }
   0x9   :  { %310 = vmatprep.mubr.bf16.mxu1 %v656_v12  ;;  %v663_v24 = vld [vmem:[%s837_s0 + $0x24] ss:$8 sps:$4 sm:$0xff]   ;;  %v667_v26 = vld [vmem:[%s837_s0 + $0x20] ss:$8 sps:$4 sm:$0xff]   ;;  %v669_v28 = vld [vmem:[%s837_s0 + $0x34] ss:$8 sps:$4 sm:$0xff]  }
   0xa   :  { %v665_v25 = vld [vmem:[%s837_s0 + $0x64] ss:$8 sps:$4 sm:$0xff]   ;;  %v668_v27 = vld [vmem:[%s837_s0 + $0x60] ss:$8 sps:$4 sm:$0xff]   ;;  %v671_v29 = vld [vmem:[%s837_s0 + $0x74] ss:$8 sps:$4 sm:$0xff]  }
   0xb   :  { %560 = vmatpush3.bf16.msra.mxu0 %v640_v5  ;;  %629 = vmatpush3.bf16.msra.mxu1 %v640_v5  ;;  %v673_v30 = vld [vmem:[%s837_s0 + $0x30] ss:$8 sps:$4 sm:$0xff]   ;;  %v794_v34 = vld [vmem:[%s838_s2] ss:$0 sm:$0xff] }
   0xc   :  { %561 = vmatprep.subr.bf16.mxu0 %v641_v6  ;;  %622 = vmatprep.subr.bf16.mxu1 %v641_v6  ;;  %v674_v31 = vld [vmem:[%s837_s0 + $0x70] ss:$8 sps:$4 sm:$0xff]  }
   0xf   :  { %562 = vmatpush3.bf16.msra.mxu0 %v642_v7  ;;  %630 = vmatpush3.bf16.msra.mxu1 %v642_v7 }
  0x10   :  { %563 = vmatprep.subr.bf16.mxu0 %v643_v8  ;;  %623 = vmatprep.subr.bf16.mxu1 %v643_v8 }
  0x13   :  { %564 = vmatpush3.bf16.msra.mxu0 %v644_v9  ;;  %631 = vmatpush3.bf16.msra.mxu1 %v644_v9 }
  0x14   :  { %565 = vmatprep.subr.bf16.mxu0 %v645_v10  ;;  %624 = vmatprep.subr.bf16.mxu1 %v645_v10 }
  0x17   :  { %566 = vmatpush3.bf16.msra.mxu0 %v646_v13  ;;  %632 = vmatpush3.bf16.msra.mxu1 %v646_v13 }
  0x18   :  { %567 = vmatprep.subr.bf16.mxu0 %v647_v14  ;;  %625 = vmatprep.subr.bf16.mxu1 %v647_v14 }
  0x1b   :  { %568 = vmatpush3.bf16.msra.mxu0 %v648_v15  ;;  %633 = vmatpush3.bf16.msra.mxu1 %v648_v15 }
  0x1c   :  { %569 = vmatprep.subr.bf16.mxu0 %v649_v16  ;;  %626 = vmatprep.subr.bf16.mxu1 %v649_v16 }
  0x1f   :  { %570 = vmatpush3.bf16.msra.mxu0 %v650_v17  ;;  %634 = vmatpush3.bf16.msra.mxu1 %v650_v17 }
  0x22   :  { %279 = vmatmul.mubr.bf16.vlgmr.msra.gmra.mrb[0].mxu0 %v651_v18  ;;  %311 = vmatmul.mubr.bf16.vlgmr.msra.gmra.mrb[0].mxu1 %v654_v19 }
  0x23   :  { %286 = vmatprep.mubr.bf16.mxu0 %v657_v20  ;;  %318 = vmatprep.mubr.bf16.mxu1 %v659_v21 }
  0x2a   :  { %287 = vmatmul.mubr.bf16.gmra.mrb[4].mxu0 %v661_v22  ;;  %319 = vmatmul.mubr.bf16.gmra.mrb[4].mxu1 %v662_v23 }
  0x2b   :  { %294 = vmatprep.mubr.bf16.mxu0 %v663_v24  ;;  %326 = vmatprep.mubr.bf16.mxu1 %v665_v25 }
  0x32   :  { %295 = vmatmul.mubr.bf16.gmra.mrb[8].mxu0 %v667_v26  ;;  %327 = vmatmul.mubr.bf16.gmra.mrb[8].mxu1 %v668_v27 }
  0x33   :  { %302 = vmatprep.mubr.bf16.mxu0 %v669_v28  ;;  %334 = vmatprep.mubr.bf16.mxu1 %v671_v29 }
  0x3a   :  { %303 = vmatmul.mubr.bf16.gmra.mrb[12].mxu0 %v673_v30  ;;  %335 = vmatmul.mubr.bf16.gmra.mrb[12].mxu1 %v674_v31 }
  0xf5   :  { %v571_v32 = vpop.f32.mrb[0].mxu0  ;;  %v595_v33 = vpop.f32.mrb[0].mxu1 }
  0xf6   :  { %v572_v35 = vpop.f32.mrb[1].mxu0  ;;  %v596_v36 = vpop.f32.mrb[1].mxu1 }
  0xf7   :  { %v573_v37 = vadd.f32 %v572_v35, %v571_v32  ;;  %v597_v38 = vadd.f32 %v596_v36, %v595_v33  ;;  %v574_v39 = vpop.f32.mrb[2].mxu0  ;;  %v598_v40 = vpop.f32.mrb[2].mxu1 }
  0xf8   :  { %v575_v41 = vpop.f32.mrb[3].mxu0  ;;  %v599_v42 = vpop.f32.mrb[3].mxu1 }
  0xf9   :  { %v281_v43 = vadd.f32 %v573_v37, %v794_v34  ;;  %v313_v44 = vadd.f32 %v597_v38, %v794_v34  ;;  %v576_v45 = vadd.f32 %v575_v41, %v574_v39  ;;  %v600_v46 = vadd.f32 %v599_v42, %v598_v40 }
  0xfb   :  { %v284_v47 = vadd.f32 %v576_v45, %v794_v34  ;;  %v316_v48 = vadd.f32 %v600_v46, %v794_v34  ;;  %v343_v49 = vmax.f32 %v281_v43, 0.0  ;;  %v351_v50 = vmax.f32 %v313_v44, 0.0 }
  0xfd   :  { %v344_v51 = vmax.f32 %v284_v47, 0.0  ;;  %v352_v52 = vmax.f32 %v316_v48, 0.0  ;;  %v577_v53 = vpop.f32.mrb[4].mxu0  ;;  %v601_v54 = vpop.f32.mrb[4].mxu1 }
  0xfe   :  { %v578_v55 = vpop.f32.mrb[5].mxu0  ;;  %v602_v56 = vpop.f32.mrb[5].mxu1 }
  0xff   :  { %v511_v57 = vpack.c.bf16 %v344_v51, %v343_v49  ;;  %v531_v58 = vpack.c.bf16 %v352_v52, %v351_v50  ;;  %v579_v59 = vadd.f32 %v578_v55, %v577_v53  ;;  %v603_v60 = vadd.f32 %v602_v56, %v601_v54  ;;  %v580_v61 = vpop.f32.mrb[6].mxu0  ;;  %v604_v62 = vpop.f32.mrb[6].mxu1 }
 0x100   :  { %v581_v63 = vpop.f32.mrb[7].mxu0  ;;  %v605_v0 = vpop.f32.mrb[7].mxu1 }
 0x101   :  { %512 = vst [vmem:[%s839_s3] sm:$0xff] %v511_v57   ;;  %551 = vst [vmem:[%s839_s3 + $0x20] sm:$0xff] %v531_v58   ;;  %v289_v1 = vadd.f32 %v579_v59, %v794_v34  ;;  %v321_v2 = vadd.f32 %v603_v60, %v794_v34  ;;  %v582_v3 = vadd.f32 %v581_v63, %v580_v61 }
 0x102   :  { %v606_v4 = vadd.f32 %v605_v0, %v604_v62 }
 0x103   :  { %v292_v5 = vadd.f32 %v582_v3, %v794_v34  ;;  %v345_v7 = vmax.f32 %v289_v1, 0.0  ;;  %v353_v8 = vmax.f32 %v321_v2, 0.0 }
 0x104   :  { %v324_v6 = vadd.f32 %v606_v4, %v794_v34 }
 0x105   :  { %v346_v9 = vmax.f32 %v292_v5, 0.0  ;;  %v583_v11 = vpop.f32.mrb[8].mxu0  ;;  %v607_v12 = vpop.f32.mrb[8].mxu1 }
 0x106   :  { %v354_v10 = vmax.f32 %v324_v6, 0.0  ;;  %v584_v13 = vpop.f32.mrb[9].mxu0  ;;  %v608_v14 = vpop.f32.mrb[9].mxu1 }
 0x107   :  { %v516_v15 = vpack.c.bf16 %v346_v9, %v345_v7  ;;  %v585_v17 = vadd.f32 %v584_v13, %v583_v11  ;;  %v609_v18 = vadd.f32 %v608_v14, %v607_v12  ;;  %v586_v19 = vpop.f32.mrb[10].mxu0  ;;  %v610_v20 = vpop.f32.mrb[10].mxu1 }
 0x108   :  { %v536_v16 = vpack.c.bf16 %v354_v10, %v353_v8  ;;  %v587_v21 = vpop.f32.mrb[11].mxu0  ;;  %v611_v22 = vpop.f32.mrb[11].mxu1 }
 0x109   :  { %548 = vst [vmem:[%s839_s3 + $0x8] sm:$0xff] %v516_v15   ;;  %v297_v23 = vadd.f32 %v585_v17, %v794_v34  ;;  %v329_v24 = vadd.f32 %v609_v18, %v794_v34  ;;  %v588_v25 = vadd.f32 %v587_v21, %v586_v19  ;;  %v612_v26 = vadd.f32 %v611_v22, %v610_v20 }
 0x10a   :  { %552 = vst [vmem:[%s839_s3 + $0x28] sm:$0xff] %v536_v16  }
 0x10b   :  { %v300_v27 = vadd.f32 %v588_v25, %v794_v34  ;;  %v332_v28 = vadd.f32 %v612_v26, %v794_v34  ;;  %v347_v29 = vmax.f32 %v297_v23, 0.0  ;;  %v355_v30 = vmax.f32 %v329_v24, 0.0 }
 0x10d   :  { %v348_v31 = vmax.f32 %v300_v27, 0.0  ;;  %v356_v32 = vmax.f32 %v332_v28, 0.0  ;;  %v589_v33 = vpop.f32.mrb[12].mxu0  ;;  %v613_v35 = vpop.f32.mrb[12].mxu1 }
 0x10e   :  { %v590_v36 = vpop.f32.mrb[13].mxu0  ;;  %v614_v37 = vpop.f32.mrb[13].mxu1 }
 0x10f   :  { %v521_v38 = vpack.c.bf16 %v348_v31, %v347_v29  ;;  %v541_v39 = vpack.c.bf16 %v356_v32, %v355_v30  ;;  %v591_v40 = vadd.f32 %v590_v36, %v589_v33  ;;  %v615_v41 = vadd.f32 %v614_v37, %v613_v35  ;;  %v592_v42 = vpop.f32.mrb[14].mxu0  ;;  %v616_v43 = vpop.f32.mrb[14].mxu1 }
 0x110   :  { %v593_v44 = vpop.f32.mrb[15].mxu0  ;;  %v617_v45 = vpop.f32.mrb[15].mxu1 }
 0x111   :  { %549 = vst [vmem:[%s839_s3 + $0x10] sm:$0xff] %v521_v38   ;;  %553 = vst [vmem:[%s839_s3 + $0x30] sm:$0xff] %v541_v39   ;;  %v305_v46 = vadd.f32 %v591_v40, %v794_v34  ;;  %v337_v47 = vadd.f32 %v615_v41, %v794_v34  ;;  %v594_v48 = vadd.f32 %v593_v44, %v592_v42 }
 0x112   :  { %v618_v49 = vadd.f32 %v617_v45, %v616_v43 }
 0x113   :  { %v308_v50 = vadd.f32 %v594_v48, %v794_v34  ;;  %v349_v52 = vmax.f32 %v305_v46, 0.0  ;;  %v357_v53 = vmax.f32 %v337_v47, 0.0 }
 0x114   :  { %v340_v51 = vadd.f32 %v618_v49, %v794_v34 }
 0x115   :  { %v350_v54 = vmax.f32 %v308_v50, 0.0 }
 0x116   :  { %v358_v55 = vmax.f32 %v340_v51, 0.0 }
 0x117   :  { %v526_v56 = vpack.c.bf16 %v350_v54, %v349_v52 }
 0x118   :  { %v546_v57 = vpack.c.bf16 %v358_v55, %v357_v53 }
 0x119   :  { %550 = vst [vmem:[%s839_s3 + $0x18] sm:$0xff] %v526_v56  }
 0x11a   :  { %554 = vst [vmem:[%s839_s3 + $0x38] sm:$0xff] %v546_v57  }

// kernel: deep_q_network_forward.4
= control target key start
LH: loop header
LB: loop body
LE: loop exit
PB: predicated region body
PF: predicated region fallthrough
CT: control target
= control target key end

     0   :  { %s761_s1 = inlined_call_operand.vmem [shape: bf16[512,128], index: 1, kind: input, shape index: {}]   ;;  %s762_s0 = inlined_call_operand.vmem [shape: bf16[32,512], index: 0, kind: input, shape index: {}]   ;;  %s763_s2 = inlined_call_operand.vmem [shape: f32[1,128], index: 2, kind: input, shape index: {}]   ;;  %s764_s3 = inlined_call_operand.vmem [shape: bf16[32,128], index: 3, kind: output, shape index: {}]  }
   0x1   :  { %v568_v0 = vld [vmem:[%s761_s1 + $0x40] sm:$0xff]   ;;  %v572_v4 = vld [vmem:[%s761_s1 + $0x48] sm:$0xff]   ;;  %v576_v8 = vld [vmem:[%s761_s1 + $0x50] sm:$0xff]  }
   0x2   :  { %v569_v1 = vld [vmem:[%s761_s1 + $0xc0] sm:$0xff]   ;;  %512 = vmatprep.subr.bf16.mxu0 %v568_v0  ;;  %v573_v5 = vld [vmem:[%s761_s1 + $0xc8] sm:$0xff]   ;;  %v577_v9 = vld [vmem:[%s761_s1 + $0xd0] sm:$0xff]  }
   0x3   :  { %v570_v2 = vld [vmem:[%s761_s1] sm:$0xff]   ;;  %540 = vmatprep.subr.bf16.mxu1 %v569_v1  ;;  %v574_v6 = vld [vmem:[%s761_s1 + $0x8] sm:$0xff]   ;;  %v578_v10 = vld [vmem:[%s761_s1 + $0x10] sm:$0xff]  }
   0x4   :  { %v571_v3 = vld [vmem:[%s761_s1 + $0x80] sm:$0xff]   ;;  %513 = vmatpush3.bf16.msra.mxu0 %v570_v2  ;;  %v575_v7 = vld [vmem:[%s761_s1 + $0x88] sm:$0xff]   ;;  %v579_v11 = vld [vmem:[%s761_s1 + $0x90] sm:$0xff]  }
   0x5   :  { %541 = vmatpush3.bf16.msra.mxu1 %v571_v3  ;;  %514 = vmatprep.subr.bf16.mxu0 %v572_v4  ;;  %v580_v12 = vld [vmem:[%s761_s1 + $0x58] sm:$0xff]   ;;  %v584_v16 = vld [vmem:[%s761_s1 + $0x60] sm:$0xff]   ;;  %v588_v20 = vld [vmem:[%s761_s1 + $0x68] sm:$0xff]  }
   0x6   :  { %542 = vmatprep.subr.bf16.mxu1 %v573_v5  ;;  %v581_v13 = vld [vmem:[%s761_s1 + $0xd8] sm:$0xff]   ;;  %v585_v17 = vld [vmem:[%s761_s1 + $0xe0] sm:$0xff]   ;;  %v589_v21 = vld [vmem:[%s761_s1 + $0xe8] sm:$0xff]  }
   0x7   :  { %v582_v14 = vld [vmem:[%s761_s1 + $0x18] sm:$0xff]   ;;  %v586_v18 = vld [vmem:[%s761_s1 + $0x20] sm:$0xff]   ;;  %v590_v22 = vld [vmem:[%s761_s1 + $0x28] sm:$0xff]  }
   0x8   :  { %515 = vmatpush3.bf16.msra.mxu0 %v574_v6  ;;  %v583_v15 = vld [vmem:[%s761_s1 + $0x98] sm:$0xff]   ;;  %v587_v19 = vld [vmem:[%s761_s1 + $0xa0] sm:$0xff]   ;;  %v591_v23 = vld [vmem:[%s761_s1 + $0xa8] sm:$0xff]  }
   0x9   :  { %543 = vmatpush3.bf16.msra.mxu1 %v575_v7  ;;  %516 = vmatprep.subr.bf16.mxu0 %v576_v8  ;;  %v592_v24 = vld [vmem:[%s761_s1 + $0x70] sm:$0xff]   ;;  %v596_v28 = vld [vmem:[%s761_s1 + $0x78] sm:$0xff]   ;;  %v452_v42 = vld [vmem:[%s763_s2] ss:$0 sm:$0xff] }
   0xa   :  { %544 = vmatprep.subr.bf16.mxu1 %v577_v9  ;;  %v593_v25 = vld [vmem:[%s761_s1 + $0xf0] sm:$0xff]   ;;  %v597_v29 = vld [vmem:[%s761_s1 + $0xf8] sm:$0xff]  }
   0xb   :  { %v594_v26 = vld [vmem:[%s761_s1 + $0x30] sm:$0xff]   ;;  %v598_v30 = vld [vmem:[%s761_s1 + $0x38] sm:$0xff]  }
   0xc   :  { %517 = vmatpush3.bf16.msra.mxu0 %v578_v10  ;;  %v595_v27 = vld [vmem:[%s761_s1 + $0xb0] sm:$0xff]   ;;  %v599_v31 = vld [vmem:[%s761_s1 + $0xb8] sm:$0xff]  }
   0xd   :  { %545 = vmatpush3.bf16.msra.mxu1 %v579_v11  ;;  %518 = vmatprep.subr.bf16.mxu0 %v580_v12  ;;  %v600_v32 = vld [vmem:[%s762_s0] ss:$16 sps:$4 sm:$0xff]   ;;  %v602_v33 = vld [vmem:[%s762_s0 + $0x4] ss:$16 sps:$4 sm:$0xff]   ;;  %v603_v34 = vld [vmem:[%s762_s0 + $0x8] ss:$16 sps:$4 sm:$0xff]  }
   0xe   :  { %546 = vmatprep.subr.bf16.mxu1 %v581_v13  ;;  %v605_v35 = vld [vmem:[%s762_s0 + $0xc] ss:$16 sps:$4 sm:$0xff]   ;;  %358 = vmatprep.mubr.bf16.mxu0 %v602_v33  ;;  %v606_v36 = vld [vmem:[%s762_s0 + $0x24] ss:$16 sps:$4 sm:$0xff]   ;;  %v610_v38 = vld [vmem:[%s762_s0 + $0x20] ss:$16 sps:$4 sm:$0xff]  }
   0xf   :  { %407 = vmatprep.mubr.bf16.mxu1 %v605_v35  ;;  %v608_v37 = vld [vmem:[%s762_s0 + $0x2c] ss:$16 sps:$4 sm:$0xff]   ;;  %v611_v39 = vld [vmem:[%s762_s0 + $0x28] ss:$16 sps:$4 sm:$0xff]  }
  0x10   :  { %519 = vmatpush3.bf16.msra.mxu0 %v582_v14 }
  0x11   :  { %547 = vmatpush3.bf16.msra.mxu1 %v583_v15  ;;  %520 = vmatprep.subr.bf16.mxu0 %v584_v16 }
  0x12   :  { %548 = vmatprep.subr.bf16.mxu1 %v585_v17 }
  0x14   :  { %521 = vmatpush3.bf16.msra.mxu0 %v586_v18 }
  0x15   :  { %549 = vmatpush3.bf16.msra.mxu1 %v587_v19  ;;  %522 = vmatprep.subr.bf16.mxu0 %v588_v20 }
  0x16   :  { %550 = vmatprep.subr.bf16.mxu1 %v589_v21 }
  0x18   :  { %523 = vmatpush3.bf16.msra.mxu0 %v590_v22 }
  0x19   :  { %551 = vmatpush3.bf16.msra.mxu1 %v591_v23  ;;  %524 = vmatprep.subr.bf16.mxu0 %v592_v24 }
  0x1a   :  { %552 = vmatprep.subr.bf16.mxu1 %v593_v25 }
  0x1c   :  { %525 = vmatpush3.bf16.msra.mxu0 %v594_v26 }
  0x1d   :  { %553 = vmatpush3.bf16.msra.mxu1 %v595_v27  ;;  %526 = vmatprep.subr.bf16.mxu0 %v596_v28 }
  0x1e   :  { %554 = vmatprep.subr.bf16.mxu1 %v597_v29 }
  0x20   :  { %527 = vmatpush3.bf16.msra.mxu0 %v598_v30 }
  0x21   :  { %555 = vmatpush3.bf16.msra.mxu1 %v599_v31 }
  0x23   :  { %359 = vmatmul.mubr.bf16.vlgmr.msra.gmra.mrb[0].mxu0 %v600_v32 }
  0x24   :  { %408 = vmatmul.mubr.bf16.vlgmr.msra.gmra.mrb[0].mxu1 %v603_v34  ;;  %366 = vmatprep.mubr.bf16.mxu0 %v606_v36 }
  0x25   :  { %415 = vmatprep.mubr.bf16.mxu1 %v608_v37 }
  0x2b   :  { %367 = vmatmul.mubr.bf16.gmra.mrb[4].mxu0 %v610_v38 }
  0x2c   :  { %416 = vmatmul.mubr.bf16.gmra.mrb[4].mxu1 %v611_v39 }
  0xf6   :  { %v528_v40 = vpop.f32.mrb[0].mxu0 }
  0xf7   :  { %v556_v41 = vpop.f32.mrb[0].mxu1  ;;  %v529_v43 = vpop.f32.mrb[1].mxu0 }
  0xf8   :  { %v530_v44 = vadd.f32 %v529_v43, %v528_v40  ;;  %v557_v45 = vpop.f32.mrb[1].mxu1  ;;  %v531_v46 = vpop.f32.mrb[2].mxu0 }
  0xf9   :  { %v558_v47 = vadd.f32 %v557_v45, %v556_v41  ;;  %v559_v48 = vpop.f32.mrb[2].mxu1  ;;  %v532_v49 = vpop.f32.mrb[3].mxu0 }
  0xfa   :  { %v361_v50 = vadd.f32 %v530_v44, %v452_v42  ;;  %v533_v51 = vadd.f32 %v532_v49, %v531_v46  ;;  %v560_v52 = vpop.f32.mrb[3].mxu1 }
  0xfb   :  { %v561_v53 = vadd.f32 %v560_v52, %v559_v48 }
  0xfc   :  { %v410_v54 = vadd.f32 %v558_v47, %v361_v50  ;;  %v364_v55 = vadd.f32 %v533_v51, %v452_v42 }
  0xfe   :  { %v413_v56 = vadd.f32 %v561_v53, %v364_v55  ;;  %v534_v57 = vpop.f32.mrb[4].mxu0  ;;  %v424_v60 = vmax.f32 %v410_v54, 0.0 }
  0xff   :  { %v562_v58 = vpop.f32.mrb[4].mxu1  ;;  %v535_v59 = vpop.f32.mrb[5].mxu0 }
 0x100   :  { %v425_v61 = vmax.f32 %v413_v56, 0.0  ;;  %v536_v62 = vadd.f32 %v535_v59, %v534_v57  ;;  %v563_v63 = vpop.f32.mrb[5].mxu1  ;;  %v537_v0 = vpop.f32.mrb[6].mxu0 }
 0x101   :  { %v564_v1 = vadd.f32 %v563_v63, %v562_v58  ;;  %v565_v2 = vpop.f32.mrb[6].mxu1  ;;  %v538_v3 = vpop.f32.mrb[7].mxu0 }
 0x102   :  { %v504_v4 = vpack.c.bf16 %v425_v61, %v424_v60  ;;  %v369_v5 = vadd.f32 %v536_v62, %v452_v42  ;;  %v539_v6 = vadd.f32 %v538_v3, %v537_v0  ;;  %v566_v7 = vpop.f32.mrb[7].mxu1 }
 0x103   :  { %v567_v8 = vadd.f32 %v566_v7, %v565_v2 }
 0x104   :  { %505 = vst [vmem:[%s764_s3] sm:$0xff] %v504_v4   ;;  %v418_v9 = vadd.f32 %v564_v1, %v369_v5  ;;  %v372_v10 = vadd.f32 %v539_v6, %v452_v42 }
 0x106   :  { %v421_v11 = vadd.f32 %v567_v8, %v372_v10  ;;  %v426_v12 = vmax.f32 %v418_v9, 0.0 }
 0x108   :  { %v427_v13 = vmax.f32 %v421_v11, 0.0 }
 0x10a   :  { %v509_v14 = vpack.c.bf16 %v427_v13, %v426_v12 }
 0x10c   :  { %511 = vst [vmem:[%s764_s3 + $0x8] sm:$0xff] %v509_v14  }

// kernel: deep_q_network_forward.5
= control target key start
LH: loop header
LB: loop body
LE: loop exit
PB: predicated region body
PF: predicated region fallthrough
CT: control target
= control target key end

     0   :  { %v1451_v33 = vmov 0.0   ;;  %vm1452_vm0 = vmmov 0   ;;  %v1453_v55 = vmov 0   ;;  %vm624_vm1 = vcmask 523264   ;;  %s1790_s1 = inlined_call_operand.vmem [shape: bf16[640,64], index: 1, kind: input, shape index: {}]   ;;  %s1791_s0 = inlined_call_operand.vmem [shape: bf16[16,640], index: 0, kind: input, shape index: {}]   ;;  %s1792_s3 = inlined_call_operand.vmem [shape: bf16[64,512], index: 3, kind: input, shape index: {}]   ;;  %s1793_s5 = inlined_call_operand.vmem [shape: bf16[512,128], index: 5, kind: input, shape index: {}]   ;;  %s1794_s2 = inlined_call_operand.vmem [shape: f32[1,64], index: 2, kind: input, shape index: {}]   ;;  %s1795_s4 = inlined_call_operand.vmem [shape: f32[1,512], index: 4, kind: input, shape index: {}]   ;;  %s1796_s6 = inlined_call_operand.vmem [shape: f32[1,128], index: 6, kind: input, shape index: {}]   ;;  %s1797_s7 = inlined_call_operand.vmem [shape: f32[16,128], index: 7, kind: output, shape index: {}]  }
   0x1   :  { %v1348_v0 = vld [vmem:[%s1790_s1 + $0x40] sm:$0xff]   ;;  %v1352_v4 = vld [vmem:[%s1790_s1 + $0x48] sm:$0xff]   ;;  %v1356_v8 = vld [vmem:[%s1790_s1 + $0x50] sm:$0xff]  }
   0x2   :  { %v1349_v1 = vld [vmem:[%s1790_s1] sm:$0xff]   ;;  %1228 = vmatprep.subr.bf16.mxu0 %v1348_v0  ;;  %v1353_v5 = vld [vmem:[%s1790_s1 + $0x8] sm:$0xff]   ;;  %v1357_v9 = vld [vmem:[%s1790_s1 + $0x10] sm:$0xff]  }
   0x3   :  { %v1350_v2 = vld [vmem:[%s1790_s1 + $0xc0] sm:$0xff]   ;;  %1229 = vmatpush3.bf16.msra.mxu0 %v1349_v1  ;;  %v1354_v6 = vld [vmem:[%s1790_s1 + $0xc8] sm:$0xff]   ;;  %v1358_v10 = vld [vmem:[%s1790_s1 + $0xd0] sm:$0xff]  }
   0x4   :  { %v1351_v3 = vld [vmem:[%s1790_s1 + $0x80] sm:$0xff]   ;;  %1250 = vmatprep.subr.bf16.mxu1 %v1350_v2  ;;  %1230 = vmatprep.subr.bf16.mxu0 %v1352_v4  ;;  %v1355_v7 = vld [vmem:[%s1790_s1 + $0x88] sm:$0xff]   ;;  %v1359_v11 = vld [vmem:[%s1790_s1 + $0x90] sm:$0xff]  }
   0x5   :  { %1251 = vmatpush3.bf16.msra.mxu1 %v1351_v3  ;;  %v1360_v12 = vld [vmem:[%s1790_s1 + $0x58] sm:$0xff]   ;;  %v1364_v16 = vld [vmem:[%s1790_s1 + $0x60] sm:$0xff]   ;;  %v1368_v20 = vld [vmem:[%s1790_s1 + $0x68] sm:$0xff]  }
   0x6   :  { %1252 = vmatprep.subr.bf16.mxu1 %v1354_v6  ;;  %v1361_v13 = vld [vmem:[%s1790_s1 + $0x18] sm:$0xff]   ;;  %v1365_v17 = vld [vmem:[%s1790_s1 + $0x20] sm:$0xff]   ;;  %v1369_v21 = vld [vmem:[%s1790_s1 + $0x28] sm:$0xff]  }
   0x7   :  { %1231 = vmatpush3.bf16.msra.mxu0 %v1353_v5  ;;  %v1362_v14 = vld [vmem:[%s1790_s1 + $0xd8] sm:$0xff]   ;;  %v1366_v18 = vld [vmem:[%s1790_s1 + $0xe0] sm:$0xff]   ;;  %v1370_v22 = vld [vmem:[%s1790_s1 + $0xe8] sm:$0xff]  }
   0x8   :  { %1232 = vmatprep.subr.bf16.mxu0 %v1356_v8  ;;  %v1363_v15 = vld [vmem:[%s1790_s1 + $0x98] sm:$0xff]   ;;  %v1367_v19 = vld [vmem:[%s1790_s1 + $0xa0] sm:$0xff]   ;;  %v1371_v23 = vld [vmem:[%s1790_s1 + $0xa8] sm:$0xff]  }
   0x9   :  { %1253 = vmatpush3.bf16.msra.mxu1 %v1355_v7  ;;  %v1372_v24 = vld [vmem:[%s1790_s1 + $0x70] sm:$0xff]   ;;  %v1376_v28 = vld [vmem:[%s1790_s1 + $0x78] sm:$0xff]   ;;  %v1385_v36 = vld [vmem:[%s1791_s0 + $0xc] ss:$20 sps:$4 sm:$0xff]  }
   0xa   :  { %1254 = vmatprep.subr.bf16.mxu1 %v1358_v10  ;;  %v1373_v25 = vld [vmem:[%s1790_s1 + $0x30] sm:$0xff]   ;;  %v1377_v29 = vld [vmem:[%s1790_s1 + $0x38] sm:$0xff]   ;;  %v1386_v37 = vld [vmem:[%s1790_s1 + $0x100] sm:$0xff]   ;;  %467 = vmatprep.mubr.bf16.mxu1 %v1385_v36 }
   0xb   :  { %1233 = vmatpush3.bf16.msra.mxu0 %v1357_v9  ;;  %v1374_v26 = vld [vmem:[%s1790_s1 + $0xf0] sm:$0xff]   ;;  %v1378_v30 = vld [vmem:[%s1790_s1 + $0xf8] sm:$0xff]   ;;  %v1387_v38 = vld [vmem:[%s1790_s1 + $0x108] sm:$0xff]  }
   0xc   :  { %1234 = vmatprep.subr.bf16.mxu0 %v1360_v12  ;;  %v1375_v27 = vld [vmem:[%s1790_s1 + $0xb0] sm:$0xff]   ;;  %v1381_v32 = vld [vmem:[%s1791_s0 + $0x4] ss:$20 sps:$4 sm:$0xff]   ;;  %v1383_v35 = vld [vmem:[%s1791_s0 + $0x8] ss:$20 sps:$4 sm:$0xff]  }
   0xd   :  { %1255 = vmatpush3.bf16.msra.mxu1 %v1359_v11  ;;  %v1379_v31 = vld [vmem:[%s1791_s0] ss:$20 sps:$4 sm:$0xff]   ;;  %v1382_v34 = vld [vmem:[%s1790_s1 + $0xb8] sm:$0xff]   ;;  %426 = vmatprep.mubr.bf16.mxu0 %v1381_v32  ;;  %v1391_v42 = vld [vmem:[%s1790_s1 + $0x128] sm:$0xff]  }
   0xe   :  { %1256 = vmatprep.subr.bf16.mxu1 %v1362_v14  ;;  %v1388_v39 = vld [vmem:[%s1790_s1 + $0x110] sm:$0xff]   ;;  %v1389_v40 = vld [vmem:[%s1790_s1 + $0x118] sm:$0xff]   ;;  %v1390_v41 = vld [vmem:[%s1790_s1 + $0x120] sm:$0xff]  }
   0xf   :  { %1235 = vmatpush3.bf16.msra.mxu0 %v1361_v13  ;;  %v1392_v43 = vld [vmem:[%s1790_s1 + $0x130] sm:$0xff]   ;;  %v1393_v44 = vld [vmem:[%s1790_s1 + $0x138] sm:$0xff]   ;;  %v1419_v56 = vld [vmem:[%s1793_s5 + $0x40] sm:$0xff]  }
  0x10   :  { %1236 = vmatprep.subr.bf16.mxu0 %v1364_v16  ;;  %v1394_v45 = vld [vmem:[%s1791_s0 + $0x10] ss:$20 sps:$4 sm:$0xff]   ;;  %v1409_v54 = vld [vmem:[%s1792_s3 + $0xc] ss:$16 sps:$4 sm:$0xff]   ;;  %v1131_v4 = vld [vmem:[%s1794_s2] ss:$0 sm:$0xff] }
  0x11   :  { %1257 = vmatpush3.bf16.msra.mxu1 %v1363_v15  ;;  %v1395_v46 = vld [vmem:[%s1792_s3] ss:$16 sps:$4 sm:$0xff]   ;;  %v1397_v47 = vld [vmem:[%s1792_s3 + $0x4] ss:$16 sps:$4 sm:$0xff]   ;;  %v1421_v58 = vld [vmem:[%s1793_s5 + $0x48] sm:$0xff]  }
  0x12   :  { %1258 = vmatprep.subr.bf16.mxu1 %v1366_v18  ;;  %v1398_v48 = vld [vmem:[%s1792_s3 + $0x20] ss:$16 sps:$4 sm:$0xff]   ;;  %v1400_v49 = vld [vmem:[%s1792_s3 + $0x24] ss:$16 sps:$4 sm:$0xff]   ;;  %v1422_v59 = vld [vmem:[%s1793_s5 + $0x8] sm:$0xff]  }
  0x13   :  { %1237 = vmatpush3.bf16.msra.mxu0 %v1365_v17  ;;  %v1403_v50 = vld [vmem:[%s1792_s3 + $0x44] ss:$16 sps:$4 sm:$0xff]   ;;  %v1401_v51 = vld [vmem:[%s1792_s3 + $0x40] ss:$16 sps:$4 sm:$0xff]   ;;  %v1425_v62 = vld [vmem:[%s1793_s5 + $0x58] sm:$0xff]  }
  0x14   :  { %1238 = vmatprep.subr.bf16.mxu0 %v1368_v20  ;;  %v1406_v52 = vld [vmem:[%s1792_s3 + $0x64] ss:$16 sps:$4 sm:$0xff]   ;;  %v1404_v53 = vld [vmem:[%s1792_s3 + $0x60] ss:$16 sps:$4 sm:$0xff]   ;;  %v1426_v63 = vld [vmem:[%s1793_s5 + $0x18] sm:$0xff]  }
  0x15   :  { %1259 = vmatpush3.bf16.msra.mxu1 %v1367_v19  ;;  %v1420_v57 = vld [vmem:[%s1793_s5] sm:$0xff]   ;;  %v1423_v60 = vld [vmem:[%s1793_s5 + $0x50] sm:$0xff]   ;;  %v1432_v2 = vld [vmem:[%s1793_s5 + $0x68] sm:$0xff]  }
  0x16   :  { %1260 = vmatprep.subr.bf16.mxu1 %v1370_v22  ;;  %v1424_v61 = vld [vmem:[%s1793_s5 + $0x10] sm:$0xff]   ;;  %v1428_v0 = vld [vmem:[%s1793_s5 + $0x60] sm:$0xff]   ;;  %v1415_v32 = vld [vmem:[%s1792_s3 + $0x4c] ss:$16 sps:$4 sm:$0xff]  }
  0x17   :  { %1239 = vmatpush3.bf16.msra.mxu0 %v1369_v21  ;;  %v1430_v1 = vld [vmem:[%s1793_s5 + $0x20] sm:$0xff]  }
  0x18   :  { %1240 = vmatprep.subr.bf16.mxu0 %v1372_v24  ;;  %v1427_v36 = vld [vmem:[%s1793_s5 + $0xc0] sm:$0xff]  }
  0x19   :  { %1261 = vmatpush3.bf16.msra.mxu1 %v1371_v23 }
  0x1a   :  { %1262 = vmatprep.subr.bf16.mxu1 %v1374_v26 }
  0x1b   :  { %1241 = vmatpush3.bf16.msra.mxu0 %v1373_v25 }
  0x1c   :  { %1242 = vmatprep.subr.bf16.mxu0 %v1376_v28  ;;  %v1407_v28 = vld [vmem:[%s1792_s3 + $0x8] ss:$16 sps:$4 sm:$0xff]  }
  0x1d   :  { %1263 = vmatpush3.bf16.msra.mxu1 %v1375_v27 }
  0x1e   :  { %1264 = vmatprep.subr.bf16.mxu1 %v1378_v30  ;;  %v1412_v30 = vld [vmem:[%s1792_s3 + $0x2c] ss:$16 sps:$4 sm:$0xff]  }
  0x1f   :  { %1243 = vmatpush3.bf16.msra.mxu0 %v1377_v29 }
  0x20   :  { %1325 = vmatprep.subr.bf16.mxu0 %v1451_v33 }
  0x21   :  { %1265 = vmatpush3.bf16.msra.mxu1 %v1382_v34  ;;  %v1418_v34 = vld [vmem:[%s1792_s3 + $0x6c] ss:$16 sps:$4 sm:$0xff]  }
  0x22   :  { %427 = vmatmul.mubr.bf16.vlgmr.msra.gmra.mrb[0].mxu0 %v1379_v31  ;;  %628 = vmatprep.subr.bf16.mxu1 %v1397_v47  ;;  %v1410_v31 = vld [vmem:[%s1792_s3 + $0x28] ss:$16 sps:$4 sm:$0xff]  }
  0x23   :  { %1341 = vmatprep.mubr.msk.bf16.mxu0 %vm1452_vm0, %v1451_v33  ;;  %1326 = vmatpush3.bf16.msra.mxu0 %v1386_v37  ;;  %v1429_v37 = vld [vmem:[%s1793_s5 + $0x80] sm:$0xff]   ;;  %v1441_v47 = vld [vmem:[%s1793_s5 + $0x98] sm:$0xff]  }
  0x24   :  { %468 = vmatmul.mubr.bf16.vlgmr.msra.gmra.mrb[0].mxu1 %v1383_v35  ;;  %1327 = vmatprep.subr.bf16.mxu0 %v1451_v33  ;;  %v1416_v35 = vld [vmem:[%s1792_s3 + $0x68] ss:$16 sps:$4 sm:$0xff]  }
  0x25   :  { %629 = vmatpush1.bf16.msra.mxu1 %v1395_v46  ;;  %660 = vmatprep.mubr.bf16.mxu1 %v1453_v55  ;;  %v1440_v46 = vld [vmem:[%s1793_s5 + $0x78] sm:$0xff]  }
  0x26   :  { %630 = vmatprep.subr.bf16.mxu1 %v1400_v49  ;;  %v1443_v49 = vld [vmem:[%s1793_s5 + $0xe0] sm:$0xff]  }
  0x27   :  { %1328 = vmatpush3.bf16.msra.mxu0 %v1387_v38  ;;  %v1431_v38 = vld [vmem:[%s1793_s5 + $0xc8] sm:$0xff]  }
  0x28   :  { %1329 = vmatprep.subr.bf16.mxu0 %v1451_v33 }
  0x29   :  { %631 = vmatpush1.bf16.msra.mxu1 %v1398_v48  ;;  %v1442_v48 = vld [vmem:[%s1793_s5 + $0x38] sm:$0xff]  }
  0x2a   :  { %632 = vmatprep.subr.bf16.mxu1 %v1403_v50  ;;  %v1444_v50 = vld [vmem:[%s1793_s5 + $0xa0] sm:$0xff]  }
  0x2b   :  { %1330 = vmatpush3.bf16.msra.mxu0 %v1388_v39  ;;  %v1433_v39 = vld [vmem:[%s1793_s5 + $0x88] sm:$0xff]  }
  0x2c   :  { %1331 = vmatprep.subr.bf16.mxu0 %v1451_v33 }
  0x2d   :  { %633 = vmatpush1.bf16.msra.mxu1 %v1401_v51  ;;  %v1445_v51 = vld [vmem:[%s1793_s5 + $0xe8] sm:$0xff]  }
  0x2e   :  { %634 = vmatprep.subr.bf16.mxu1 %v1406_v52  ;;  %v1446_v52 = vld [vmem:[%s1793_s5 + $0xa8] sm:$0xff]  }
  0x2f   :  { %1332 = vmatpush3.bf16.msra.mxu0 %v1389_v40  ;;  %v1434_v40 = vld [vmem:[%s1793_s5 + $0x28] sm:$0xff]  }
  0x30   :  { %1333 = vmatprep.subr.bf16.mxu0 %v1451_v33 }
  0x31   :  { %635 = vmatpush1.bf16.msra.mxu1 %v1404_v53  ;;  %v1447_v53 = vld [vmem:[%s1793_s5 + $0xf0] sm:$0xff]  }
  0x32   :  { %671 = vmatprep.subr.bf16.mxu1 %v1409_v54  ;;  %v1448_v54 = vld [vmem:[%s1793_s5 + $0xb0] sm:$0xff]  }
  0x33   :  { %1334 = vmatpush3.bf16.msra.mxu0 %v1390_v41  ;;  %v1435_v41 = vld [vmem:[%s1793_s5 + $0xd0] sm:$0xff]  }
  0x34   :  { %1335 = vmatprep.subr.bf16.mxu0 %v1451_v33 }
  0x37   :  { %1336 = vmatpush3.bf16.msra.mxu0 %v1391_v42  ;;  %v1436_v42 = vld [vmem:[%s1793_s5 + $0x70] sm:$0xff]  }
  0x38   :  { %1337 = vmatprep.subr.bf16.mxu0 %v1451_v33 }
  0x3b   :  { %1338 = vmatpush3.bf16.msra.mxu0 %v1392_v43  ;;  %v1437_v43 = vld [vmem:[%s1793_s5 + $0x90] sm:$0xff]  }
  0x3c   :  { %1339 = vmatprep.subr.bf16.mxu0 %v1451_v33  ;;  %v1413_v33 = vld [vmem:[%s1792_s3 + $0x48] ss:$16 sps:$4 sm:$0xff]  }
  0x3f   :  { %1340 = vmatpush3.bf16.msra.mxu0 %v1393_v44  ;;  %v1438_v44 = vld [vmem:[%s1793_s5 + $0x30] sm:$0xff]  }
  0x40   :  { %1281 = vmatprep.subr.bf16.mxu0 %v1419_v56  ;;  %v1450_v56 = vld [vmem:[%s1793_s5 + $0xb8] sm:$0xff]  }
  0x42   :  { %1342 = vmatmul.mubr.bf16.vlgmr.msra.gmra.mrb[4].mxu0 %v1394_v45  ;;  %v1439_v45 = vld [vmem:[%s1793_s5 + $0xd8] sm:$0xff]  }
  0x43   :  { %1282 = vmatpush3.bf16.msra.mxu0 %v1420_v57  ;;  %v740_v57 = vlaneseq }
  0x44   :  { %1283 = vmatprep.subr.bf16.mxu0 %v1421_v58 }
  0x45   :  { %v741_v58 = vshrl.u32 %v740_v57, 7 }
  0x47   :  { %1284 = vmatpush3.bf16.msra.mxu0 %v1422_v59  ;;  %v742_v59 = vsub.s32 0, %v741_v58 }
  0x48   :  { %1285 = vmatprep.subr.bf16.mxu0 %v1423_v60  ;;  %v738_v60 = vld [vmem:[%s1795_s4] sm:$0xf] }
  0x4b   :  { %1286 = vmatpush3.bf16.msra.mxu0 %v1424_v61  ;;  %v746_v61 = vsub.s32 1, %v741_v58 }
  0x4c   :  { %1287 = vmatprep.subr.bf16.mxu0 %v1425_v62  ;;  %v743_v62 = vrot.slane %v738_v60, %v742_v59 }
  0x4f   :  { %1288 = vmatpush3.bf16.msra.mxu0 %v1426_v63  ;;  %v747_v63 = vrot.slane %v738_v60, %v746_v61 }
  0x50   :  { %1289 = vmatprep.subr.bf16.mxu0 %v1428_v0 }
  0x53   :  { %1290 = vmatpush3.bf16.msra.mxu0 %v1430_v1 }
  0x54   :  { %1291 = vmatprep.subr.bf16.mxu0 %v1432_v2 }
  0x57   :  { %1292 = vmatpush3.bf16.msra.mxu0 %v1434_v40 }
  0x58   :  { %1293 = vmatprep.subr.bf16.mxu0 %v1436_v42 }
  0x5b   :  { %1294 = vmatpush3.bf16.msra.mxu0 %v1438_v44 }
  0x5c   :  { %1295 = vmatprep.subr.bf16.mxu0 %v1440_v46 }
  0x5f   :  { %1296 = vmatpush3.bf16.msra.mxu0 %v1442_v48 }
  0xf5   :  { %v1244_v3 = vpop.f32.mrb[0].mxu0 }
  0xf6   :  { %v1245_v5 = vpop.f32.mrb[1].mxu0 }
  0xf7   :  { %v1246_v6 = vadd.f32 %v1245_v5, %v1244_v3  ;;  %v1247_v7 = vpop.f32.mrb[2].mxu0  ;;  %v1266_v8 = vpop.f32.mrb[0].mxu1 }
  0xf8   :  { %v1248_v9 = vpop.f32.mrb[3].mxu0  ;;  %v1267_v12 = vpop.f32.mrb[1].mxu1 }
  0xf9   :  { %v429_v10 = vadd.f32 %v1246_v6, %v1131_v4  ;;  %v1249_v11 = vadd.f32 %v1248_v9, %v1247_v7  ;;  %v1268_v13 = vadd.f32 %v1267_v12, %v1266_v8  ;;  %v1269_v14 = vpop.f32.mrb[2].mxu1 }
  0xfa   :  { %v1270_v16 = vpop.f32.mrb[3].mxu1 }
  0xfb   :  { %v432_v15 = vadd.f32 %v1249_v11, %v1131_v4  ;;  %v1271_v17 = vadd.f32 %v1270_v16, %v1269_v14  ;;  %v470_v18 = vadd.f32 %v1268_v13, %v429_v10  ;;  %v750_v14 = vsub.s32 2, %v741_v58 }
  0xfd   :  { %v473_v19 = vadd.f32 %v1271_v17, %v432_v15  ;;  %v754_v15 = vsub.s32 3, %v741_v58  ;;  %v751_v16 = vrot.slane %v738_v60, %v750_v14 }
  0xff   :  { %v755_v17 = vrot.slane %v738_v60, %v754_v15 }
 0x115   :  { %v510_v20 = vpop.f32.mrb[4].mxu0 }
 0x116   :  { %v511_v21 = vadd.f32 %v510_v20, %v470_v18  ;;  %v1343_v22 = vpop.f32.mrb[5].mxu0 }
 0x117   :  { %v513_v23 = vpop.f32.mrb[6].mxu0 }
 0x118   :  { %v514_v24 = vadd.f32 %v513_v23, %v473_v19  ;;  %v1344_v25 = vpop.f32.mrb[7].mxu0  ;;  %v517_v26 = vmax.f32 %v511_v21, 0.0 }
 0x11a   :  { %v518_v27 = vmax.f32 %v514_v24, 0.0 }
 0x11c   :  { %v527_v29 = vpack.c.bf16 %v518_v27, %v517_v26 }
 0x11e   :  { %1193 = vmatmul.mubr.msk.bf16.vlgmr.msra.gmra.mrb[4].mxu1 %vm624_vm1, %v527_v29 }
 0x11f   :  { %672 = vmatpush1.bf16.msra.mxu1 %v1407_v28  ;;  %703 = vmatprep.mubr.bf16.mxu1 %v1453_v55  ;;  %v1449_v55 = vld [vmem:[%s1793_s5 + $0xf8] sm:$0xff]  }
 0x120   :  { %673 = vmatprep.subr.bf16.mxu1 %v1412_v30 }
 0x123   :  { %674 = vmatpush1.bf16.msra.mxu1 %v1410_v31 }
 0x124   :  { %675 = vmatprep.subr.bf16.mxu1 %v1415_v32 }
 0x127   :  { %676 = vmatpush1.bf16.msra.mxu1 %v1413_v33 }
 0x128   :  { %677 = vmatprep.subr.bf16.mxu1 %v1418_v34 }
 0x12b   :  { %678 = vmatpush1.bf16.msra.mxu1 %v1416_v35 }
 0x12c   :  { %1303 = vmatprep.subr.bf16.mxu1 %v1427_v36 }
 0x12e   :  { %1194 = vmatmul.mubr.msk.bf16.vlgmr.msra.gmra.mrb[8].mxu1 %vm624_vm1, %v527_v29 }
 0x12f   :  { %1304 = vmatpush3.bf16.msra.mxu1 %v1429_v37 }
 0x130   :  { %1305 = vmatprep.subr.bf16.mxu1 %v1431_v38  ;;  %v1195_v38 = vld [vmem:[%s1796_s6] ss:$0 sm:$0xff] }
 0x133   :  { %1306 = vmatpush3.bf16.msra.mxu1 %v1433_v39 }
 0x134   :  { %1307 = vmatprep.subr.bf16.mxu1 %v1435_v41 }
 0x137   :  { %1308 = vmatpush3.bf16.msra.mxu1 %v1437_v43 }
 0x138   :  { %1309 = vmatprep.subr.bf16.mxu1 %v1439_v45 }
 0x13b   :  { %1310 = vmatpush3.bf16.msra.mxu1 %v1441_v47 }
 0x13c   :  { %1311 = vmatprep.subr.bf16.mxu1 %v1443_v49 }
 0x13f   :  { %1312 = vmatpush3.bf16.msra.mxu1 %v1444_v50 }
 0x140   :  { %1313 = vmatprep.subr.bf16.mxu1 %v1445_v51 }
 0x143   :  { %1314 = vmatpush3.bf16.msra.mxu1 %v1446_v52 }
 0x144   :  { %1315 = vmatprep.subr.bf16.mxu1 %v1447_v53 }
 0x147   :  { %1316 = vmatpush3.bf16.msra.mxu1 %v1448_v54 }
 0x148   :  { %1317 = vmatprep.subr.bf16.mxu1 %v1449_v55 }
 0x14b   :  { %1318 = vmatpush3.bf16.msra.mxu1 %v1450_v56 }
 0x1f1   :  { %v662_v0 = vpop.f32.mrb[4].mxu1 }
 0x1f2   :  { %v760_v1 = vadd.f32 %v743_v62, %v662_v0  ;;  %v664_v2 = vpop.f32.mrb[5].mxu1 }
 0x1f3   :  { %v761_v3 = vadd.f32 %v747_v63, %v664_v2  ;;  %v666_v4 = vpop.f32.mrb[6].mxu1 }
 0x1f4   :  { %v764_v5 = vadd.f32 %v743_v62, %v666_v4  ;;  %v668_v6 = vpop.f32.mrb[7].mxu1  ;;  %v768_v8 = vmax.f32 %v760_v1, 0.0 }
 0x1f5   :  { %v765_v7 = vadd.f32 %v747_v63, %v668_v6  ;;  %v769_v10 = vmax.f32 %v761_v3, 0.0 }
 0x1f6   :  { %v772_v9 = vmax.f32 %v764_v5, 0.0 }
 0x1f7   :  { %v773_v11 = vmax.f32 %v765_v7, 0.0 }
 0x1f8   :  { %v776_v12 = vpack.c.bf16 %v772_v9, %v768_v8 }
 0x1f9   :  { %v777_v13 = vpack.c.bf16 %v773_v11, %v769_v10 }
 0x1fb   :  { %1075 = vmatprep.mubr.bf16.mxu0 %v777_v13 }
 0x1fc   :  { %1076 = vmatmul.mubr.bf16.vlgmr.msra.gmra.mrb[8].mxu0 %v776_v12 }
 0x201   :  { %v705_v18 = vpop.f32.mrb[8].mxu1 }
 0x202   :  { %v762_v19 = vadd.f32 %v751_v16, %v705_v18  ;;  %v707_v20 = vpop.f32.mrb[9].mxu1 }
 0x203   :  { %v763_v21 = vadd.f32 %v755_v17, %v707_v20  ;;  %v709_v22 = vpop.f32.mrb[10].mxu1 }
 0x204   :  { %v766_v23 = vadd.f32 %v751_v16, %v709_v22  ;;  %v711_v24 = vpop.f32.mrb[11].mxu1  ;;  %v770_v26 = vmax.f32 %v762_v19, 0.0 }
 0x205   :  { %v767_v25 = vadd.f32 %v755_v17, %v711_v24  ;;  %v771_v28 = vmax.f32 %v763_v21, 0.0 }
 0x206   :  { %v774_v27 = vmax.f32 %v766_v23, 0.0 }
 0x207   :  { %v775_v29 = vmax.f32 %v767_v25, 0.0 }
 0x208   :  { %v778_v30 = vpack.c.bf16 %v774_v27, %v770_v26 }
 0x209   :  { %v779_v31 = vpack.c.bf16 %v775_v29, %v771_v28 }
 0x20b   :  { %1116 = vmatprep.mubr.bf16.mxu1 %v779_v31 }
 0x20c   :  { %1117 = vmatmul.mubr.bf16.vlgmr.msra.gmra.mrb[12].mxu1 %v778_v30 }
 0x2cf   :  { %v1297_v32 = vpop.f32.mrb[8].mxu0 }
 0x2d0   :  { %v1298_v33 = vpop.f32.mrb[9].mxu0 }
 0x2d1   :  { %v1299_v34 = vadd.f32 %v1298_v33, %v1297_v32  ;;  %v1300_v35 = vpop.f32.mrb[10].mxu0 }
 0x2d2   :  { %v1301_v36 = vpop.f32.mrb[11].mxu0 }
 0x2d3   :  { %v1302_v37 = vadd.f32 %v1301_v36, %v1300_v35  ;;  %v1078_v41 = vadd.f32 %v1299_v34, %v1195_v38 }
 0x2d5   :  { %v1081_v45 = vadd.f32 %v1302_v37, %v1195_v38 }
 0x2df   :  { %v1319_v39 = vpop.f32.mrb[12].mxu1 }
 0x2e0   :  { %v1320_v40 = vpop.f32.mrb[13].mxu1 }
 0x2e1   :  { %v1321_v42 = vadd.f32 %v1320_v40, %v1319_v39  ;;  %v1322_v43 = vpop.f32.mrb[14].mxu1 }
 0x2e2   :  { %v1323_v44 = vpop.f32.mrb[15].mxu1 }
 0x2e3   :  { %v1119_v46 = vadd.f32 %v1321_v42, %v1078_v41  ;;  %v1324_v47 = vadd.f32 %v1323_v44, %v1322_v43 }
 0x2e5   :  { %1125 = vst [vmem:[%s1797_s7] sm:$0xff] %v1119_v46  ;;  %v1122_v48 = vadd.f32 %v1324_v47, %v1081_v45 }
 0x2e7   :  { %1126 = vst [vmem:[%s1797_s7 + $0x8] sm:$0xff] %v1122_v48 }

</bundles_post_ra>
